<compile_context>
chip_gen: v7x
topology: tpu7x:2x2x1
jax: 0.10.0
libtpu: 0.0.40
codegen_flags: <defaults>
</compile_context>

<pallas_src>
import functools

import jax
import jax.numpy as jnp
from jax.experimental import pallas as pl
from jax.experimental.pallas import tpu as pltpu


def _pick_tile(dim, candidates):
    """Largest candidate that evenly divides `dim`, else the full dim."""
    for c in candidates:
        if dim >= c and dim % c == 0:
            return c
    return dim


# --------------------------------------------------------------------------
# Pass 1: per-row (n, c) sum and sum-of-squares over HW (reduction axis last).
# --------------------------------------------------------------------------
def _stats_kernel(x_ref, sum_ref, sq_ref):
    @pl.when(pl.program_id(1) == 0)
    def _():
        sum_ref[...] = jnp.zeros_like(sum_ref)
        sq_ref[...] = jnp.zeros_like(sq_ref)

    x = x_ref[...]                                          # (TR, THW) f32
    sum_ref[...] += jnp.sum(x, axis=1, keepdims=True)
    sq_ref[...] += jnp.sum(x * x, axis=1, keepdims=True)


def _row_stats(x2, tr, thw, vmem_limit):
    rows, hw = x2.shape
    grid = (rows // tr, hw // thw)
    col_spec = pl.BlockSpec((tr, 1), lambda r, t: (r, 0))
    return pl.pallas_call(
        _stats_kernel,
        out_shape=(jax.ShapeDtypeStruct((rows, 1), jnp.float32),
                   jax.ShapeDtypeStruct((rows, 1), jnp.float32)),
        grid=grid,
        in_specs=[pl.BlockSpec((tr, thw), lambda r, t: (r, t))],
        out_specs=(col_spec, col_spec),
        compiler_params=pltpu.CompilerParams(
            dimension_semantics=("parallel", "arbitrary"),
            vmem_limit_bytes=vmem_limit),
        cost_estimate=pl.CostEstimate(
            flops=3 * rows * hw,
            transcendentals=0,
            bytes_accessed=rows * hw * 4 + rows * 8),
    )(x2)


# --------------------------------------------------------------------------
# Pass 2: streamed normalize + modulate: out = x * scale + bias
# (scale/bias are per-row (N*C, 1) columns precomputed in the wrapper).
# --------------------------------------------------------------------------
def _apply_kernel(scale_ref, bias_ref, x_ref, o_ref):
    o_ref[...] = x_ref[...] * scale_ref[...] + bias_ref[...]


def _apply(x2, scale2, bias2, tr, thw, vmem_limit):
    rows, hw = x2.shape
    grid = (rows // tr, hw // thw)
    col_spec = pl.BlockSpec((tr, 1), lambda r, t: (r, 0))
    tile_spec = pl.BlockSpec((tr, thw), lambda r, t: (r, t))
    return pl.pallas_call(
        _apply_kernel,
        out_shape=jax.ShapeDtypeStruct((rows, hw), jnp.float32),
        grid=grid,
        in_specs=[col_spec, col_spec, tile_spec],
        out_specs=tile_spec,
        compiler_params=pltpu.CompilerParams(
            dimension_semantics=("parallel", "parallel"),
            vmem_limit_bytes=vmem_limit),
        cost_estimate=pl.CostEstimate(
            flops=2 * rows * hw,
            transcendentals=0,
            bytes_accessed=2 * rows * hw * 4 + rows * 8),
    )(scale2, bias2, x2)


# --------------------------------------------------------------------------
# Wrapper: ConditionalBatchNorm forward.
# --------------------------------------------------------------------------
@functools.partial(jax.jit, static_argnums=(3,))
def conditional_batch_norm(x_nchw, cls_label, params, label_nc):
    """x_nchw: (N, C, H, W) float; cls_label: (N,) int32; params: MLP weights."""
    del label_nc  # implicit in W1's first dimension (one-hot matmul -> row gather)
    n, c, h, w = x_nchw.shape
    hw = h * w
    rows = n * c
    x2 = x_nchw.astype(jnp.float32).reshape(rows, hw)

    # Tile selection: lane-dense HW tiles, rows packed onto sublanes.
    thw = _pick_tile(hw, (1024, 512, 256, 128))
    tr = _pick_tile(rows, (256, 128, 64, 32, 16, 8))
    tile_bytes = tr * thw * 4
    # in + out tiles, double-buffered, plus headroom; clamped for v7x (64 MiB VMEM).
    vmem_limit = int(min(max(8 * tile_bytes + (2 << 20), 8 << 20), 48 << 20))

    # --- tiny conditioning MLP (row gather of W1 replaces eye()[cls] @ W1) ---
    w1, b1, wg, bg, wb, bb = params
    hidden = jax.nn.relu(w1[cls_label] + b1)        # (N, nhidden)
    gamma = hidden @ wg + bg                        # (N, C)
    beta = hidden @ wb + bb                         # (N, C)

    # --- pass 1 (Pallas): per-(n, c) sum and sum-of-squares over HW ---
    sum_nc, sq_nc = _row_stats(x2, tr, thw, vmem_limit)

    # Combine across the batch -> per-channel training-mode BN stats (biased var).
    cnt = jnp.float32(n * hw)
    mean_c = jnp.sum(sum_nc.reshape(n, c), axis=0) / cnt
    var_c = jnp.sum(sq_nc.reshape(n, c), axis=0) / cnt - mean_c * mean_c
    rstd_c = jax.lax.rsqrt(var_c + 1e-5)

    # Fold BN + SPADE modulation into per-(n, c) scale/bias:
    #   (x - mean) * rstd * (1 + gamma) + beta  ==  x * scale + bias
    scale = rstd_c[None, :] * (1.0 + gamma)         # (N, C)
    bias = beta - mean_c[None, :] * scale           # (N, C)
    scale2 = scale.reshape(rows, 1).astype(jnp.float32)
    bias2 = bias.reshape(rows, 1).astype(jnp.float32)

    # --- pass 2 (Pallas): streamed normalize + modulate ---
    out2 = _apply(x2, scale2, bias2, tr, thw, vmem_limit)
    return out2.reshape(n, c, h, w)


# --------------------------------------------------------------------------
# Pure-JAX reference (mirrors the PyTorch module, training mode).
# --------------------------------------------------------------------------
def _reference(x_nchw, cls_label, params, label_nc):
    w1, b1, wg, bg, wb, bb = params
    one_hot = jnp.eye(label_nc, dtype=jnp.float32)[cls_label]
    h = jax.nn.relu(one_hot @ w1 + b1)
    gamma = h @ wg + bg
    beta = h @ wb + bb
    mean = jnp.mean(x_nchw, axis=(0, 2, 3), keepdims=True)
    var = jnp.mean((x_nchw - mean) ** 2, axis=(0, 2, 3), keepdims=True)
    normalized = (x_nchw - mean) * jax.lax.rsqrt(var + 1e-5)
    return normalized * (1.0 + gamma[:, :, None, None]) + beta[:, :, None, None]


if __name__ == "__main__":
    # Small shapes consistent with the module: batch=2, channels(norm_nc)=4,
    # spatial=16x16, label_nc=10, nhidden=128.
    N, C, H, W = 2, 4, 16, 16
    LABEL_NC, NHIDDEN = 10, 128

    key = jax.random.PRNGKey(0)
    kx, kl, k1, k2, k3, k4, k5, k6 = jax.random.split(key, 8)

    x = jax.random.normal(kx, (N, C, H, W), dtype=jnp.float32)
    cls_label = jax.random.randint(kl, (N,), 0, LABEL_NC, dtype=jnp.int32)

    # Deterministic synthetic parameters (nn.Linear weights stored transposed
    # so the math is row-major x @ W). Biases kept 2D for TPU layout.
    w1 = 0.1 * jax.random.normal(k1, (LABEL_NC, NHIDDEN), dtype=jnp.float32)
    b1 = 0.1 * jax.random.normal(k2, (1, NHIDDEN), dtype=jnp.float32)
    wg = 0.1 * jax.random.normal(k3, (NHIDDEN, C), dtype=jnp.float32)
    bg = 0.1 * jax.random.normal(k4, (1, C), dtype=jnp.float32)
    wb = 0.1 * jax.random.normal(k5, (NHIDDEN, C), dtype=jnp.float32)
    bb = 0.1 * jax.random.normal(k6, (1, C), dtype=jnp.float32)
    params = (w1, b1, wg, bg, wb, bb)

    out = conditional_batch_norm(x, cls_label, params, LABEL_NC)
    out = jax.block_until_ready(out)

    ref = _reference(x, cls_label, params, LABEL_NC)
    assert out.shape == (N, C, H, W)
    assert jnp.max(jnp.abs(out - ref)) < 1e-4, "mismatch vs pure-JAX reference"

    print("KERNEL_OK")
</pallas_src>

<mosaic_0001>
module attributes {stable_mosaic.version = 11 : i64} {
  func.func @_stats_kernel(%arg0: i32, %arg1: i32, %arg2: memref<8x256xf32, #tpu.memory_space<vmem>>, %arg3: memref<8x1xf32, #tpu.memory_space<vmem>>, %arg4: memref<8x1xf32, #tpu.memory_space<vmem>>) attributes {dimension_semantics = [#tpu.dimension_semantics<parallel>, #tpu.dimension_semantics<arbitrary>], iteration_bounds = array<i64: 1, 1>, scalar_prefetch = 0 : i64, scratch_operands = 0 : i64, tpu.core_type = #tpu.core_type<tc>, window_params = [{transform_indices = @transform_0, window_bounds = array<i64: 8, 256>}, {transform_indices = @transform_1, window_bounds = array<i64: 8, 1>}, {transform_indices = @transform_2, window_bounds = array<i64: 8, 1>}]} {
    %c0_i32 = arith.constant 0 : i32
    %0 = arith.cmpi eq, %arg1, %c0_i32 : i32
    %1 = arith.extui %0 : i1 to i32
    %c0_i32_0 = arith.constant 0 : i32
    %2 = arith.cmpi ne, %1, %c0_i32_0 : i32
    scf.if %2 {
      %cst_11 = arith.constant 0.000000e+00 : f32
      %15 = vector.broadcast %cst_11 : f32 to vector<8x1xf32>
      %c0_12 = arith.constant 0 : index
      %c0_13 = arith.constant 0 : index
      %16 = vector.load %arg3[%c0_12, %c0_13] : memref<8x1xf32, #tpu.memory_space<vmem>>, vector<8x1xf32>
      tpu.vector_store %arg3[%c0_12, %c0_13], %15 {strides = array<i32>} : memref<8x1xf32, #tpu.memory_space<vmem>>, vector<8x1xf32>,
      %cst_14 = arith.constant 0.000000e+00 : f32
      %17 = vector.broadcast %cst_14 : f32 to vector<8x1xf32>
      %c0_15 = arith.constant 0 : index
      %c0_16 = arith.constant 0 : index
      %18 = vector.load %arg4[%c0_15, %c0_16] : memref<8x1xf32, #tpu.memory_space<vmem>>, vector<8x1xf32>
      tpu.vector_store %arg4[%c0_15, %c0_16], %17 {strides = array<i32>} : memref<8x1xf32, #tpu.memory_space<vmem>>, vector<8x1xf32>,
    } else {
    }
    %c0 = arith.constant 0 : index
    %c0_1 = arith.constant 0 : index
    %3 = vector.load %arg2[%c0, %c0_1] : memref<8x256xf32, #tpu.memory_space<vmem>>, vector<8x256xf32>
    %c0_2 = arith.constant 0 : index
    %c0_3 = arith.constant 0 : index
    %4 = vector.load %arg3[%c0_2, %c0_3] : memref<8x1xf32, #tpu.memory_space<vmem>>, vector<8x1xf32>
    %cst = arith.constant dense<0.000000e+00> : vector<8xf32>
    %5 = vector.multi_reduction <add>, %3, %cst [1] : vector<8x256xf32> to vector<8xf32>
    %6 = vector.shape_cast %5 : vector<8xf32> to vector<8x1xf32>
    %7 = arith.addf %4, %6 : vector<8x1xf32>
    %c0_4 = arith.constant 0 : index
    %c0_5 = arith.constant 0 : index
    %8 = vector.load %arg3[%c0_4, %c0_5] : memref<8x1xf32, #tpu.memory_space<vmem>>, vector<8x1xf32>
    tpu.vector_store %arg3[%c0_4, %c0_5], %7 {strides = array<i32>} : memref<8x1xf32, #tpu.memory_space<vmem>>, vector<8x1xf32>,
    %c0_6 = arith.constant 0 : index
    %c0_7 = arith.constant 0 : index
    %9 = vector.load %arg4[%c0_6, %c0_7] : memref<8x1xf32, #tpu.memory_space<vmem>>, vector<8x1xf32>
    %10 = arith.mulf %3, %3 : vector<8x256xf32>
    %cst_8 = arith.constant dense<0.000000e+00> : vector<8xf32>
    %11 = vector.multi_reduction <add>, %10, %cst_8 [1] : vector<8x256xf32> to vector<8xf32>
    %12 = vector.shape_cast %11 : vector<8xf32> to vector<8x1xf32>
    %13 = arith.addf %9, %12 : vector<8x1xf32>
    %c0_9 = arith.constant 0 : index
    %c0_10 = arith.constant 0 : index
    %14 = vector.load %arg4[%c0_9, %c0_10] : memref<8x1xf32, #tpu.memory_space<vmem>>, vector<8x1xf32>
    tpu.vector_store %arg4[%c0_9, %c0_10], %13 {strides = array<i32>} : memref<8x1xf32, #tpu.memory_space<vmem>>, vector<8x1xf32>,
    return
  }
  func.func @transform_0(%arg0: i32, %arg1: i32) -> (i32, i32) {
    %c0_i32 = arith.constant 0 : i32
    return %arg0, %arg1 : i32, i32
  }
  func.func @transform_1(%arg0: i32, %arg1: i32) -> (i32, i32) {
    %c0_i32 = arith.constant 0 : i32
    %c0_i32_0 = arith.constant 0 : i32
    return %arg0, %c0_i32 : i32, i32
  }
  func.func @transform_2(%arg0: i32, %arg1: i32) -> (i32, i32) {
    %c0_i32 = arith.constant 0 : i32
    %c0_i32_0 = arith.constant 0 : i32
    return %arg0, %c0_i32 : i32, i32
  }
}

module attributes {stable_mosaic.version = 11 : i64} {
  func.func @_apply_kernel(%arg0: i32, %arg1: i32, %arg2: memref<8x1xf32, #tpu.memory_space<vmem>>, %arg3: memref<8x1xf32, #tpu.memory_space<vmem>>, %arg4: memref<8x256xf32, #tpu.memory_space<vmem>>, %arg5: memref<8x256xf32, #tpu.memory_space<vmem>>) attributes {dimension_semantics = [#tpu.dimension_semantics<parallel>, #tpu.dimension_semantics<parallel>], iteration_bounds = array<i64: 1, 1>, scalar_prefetch = 0 : i64, scratch_operands = 0 : i64, tpu.core_type = #tpu.core_type<tc>, window_params = [{transform_indices = @transform_0, window_bounds = array<i64: 8, 1>}, {transform_indices = @transform_1, window_bounds = array<i64: 8, 1>}, {transform_indices = @transform_2, window_bounds = array<i64: 8, 256>}, {transform_indices = @transform_3, window_bounds = array<i64: 8, 256>}]} {
    %c0 = arith.constant 0 : index
    %c0_0 = arith.constant 0 : index
    %0 = vector.load %arg4[%c0, %c0_0] : memref<8x256xf32, #tpu.memory_space<vmem>>, vector<8x256xf32>
    %c0_1 = arith.constant 0 : index
    %c0_2 = arith.constant 0 : index
    %1 = vector.load %arg2[%c0_1, %c0_2] : memref<8x1xf32, #tpu.memory_space<vmem>>, vector<8x1xf32>
    %2 = vector.broadcast %1 : vector<8x1xf32> to vector<8x256xf32>
    %3 = arith.mulf %0, %2 : vector<8x256xf32>
    %c0_3 = arith.constant 0 : index
    %c0_4 = arith.constant 0 : index
    %4 = vector.load %arg3[%c0_3, %c0_4] : memref<8x1xf32, #tpu.memory_space<vmem>>, vector<8x1xf32>
    %5 = vector.broadcast %4 : vector<8x1xf32> to vector<8x256xf32>
    %6 = arith.addf %3, %5 : vector<8x256xf32>
    %c0_5 = arith.constant 0 : index
    %c0_6 = arith.constant 0 : index
    %7 = vector.load %arg5[%c0_5, %c0_6] : memref<8x256xf32, #tpu.memory_space<vmem>>, vector<8x256xf32>
    tpu.vector_store %arg5[%c0_5, %c0_6], %6 {strides = array<i32>} : memref<8x256xf32, #tpu.memory_space<vmem>>, vector<8x256xf32>,
    return
  }
  func.func @transform_0(%arg0: i32, %arg1: i32) -> (i32, i32) {
    %c0_i32 = arith.constant 0 : i32
    %c0_i32_0 = arith.constant 0 : i32
    return %arg0, %c0_i32 : i32, i32
  }
  func.func @transform_1(%arg0: i32, %arg1: i32) -> (i32, i32) {
    %c0_i32 = arith.constant 0 : i32
    %c0_i32_0 = arith.constant 0 : i32
    return %arg0, %c0_i32 : i32, i32
  }
  func.func @transform_2(%arg0: i32, %arg1: i32) -> (i32, i32) {
    %c0_i32 = arith.constant 0 : i32
    return %arg0, %arg1 : i32, i32
  }
  func.func @transform_3(%arg0: i32, %arg1: i32) -> (i32, i32) {
    %c0_i32 = arith.constant 0 : i32
    return %arg0, %arg1 : i32, i32
  }
}

</mosaic_0001>

<bundles_post_ra>
// kernel: conditional_batch_norm.2
= control target key start
LH: loop header
LB: loop body
LE: loop exit
PB: predicated region body
PF: predicated region fallthrough
CT: control target
= control target key end

     0   :  { %vm14_vm0 = vcmask 7168   ;;  %v43_v2 = vmov 0.0   ;;  %s87_s0 = inlined_call_operand.vmem [shape: f32[8,256], index: 0, kind: input, shape index: {}]   ;;  %s88_s1 = inlined_call_operand.vmem [shape: f32[8,1], index: 1, kind: output, shape index: {0}]   ;;  %s89_s2 = inlined_call_operand.vmem [shape: f32[8,1], index: 2, kind: output, shape index: {1}]  }
   0x1   :  { %v17_v0 = vld [vmem:[%s87_s0] sm:$0xff]  ;;  %v18_v1 = vld [vmem:[%s87_s0 + $0x8] sm:$0xff]  ;;  %15 = vst.msk [vmem:[%s88_s1] sm:$0xff] %vm14_vm0, %v43_v2  ;;  %16 = vst.msk [vmem:[%s89_s2] sm:$0xff] %vm14_vm0, %v43_v2 }
   0x2   :  { %v20_v3 = vadd.f32 %v18_v1, %v17_v0  ;;  %v27_v4 = vmul.f32 %v17_v0, %v17_v0  ;;  %v28_v5 = vmul.f32 %v18_v1, %v18_v1 }
   0x4   :  { %21 = vadd.xlane.f32.xlu0 %v20_v3  ;;  %v29_v6 = vadd.f32 %v28_v5, %v27_v4 }
   0x8   :  { %30 = vadd.xlane.f32.xlu0 %v29_v6  ;;  %v19_v7 = vld [vmem:[%s88_s1] sm:$0xff] }
   0x9   :  { %v26_v10 = vld [vmem:[%s89_s2] sm:$0xff] }
  0x91   :  { %v22_v8 = vpop.xlane.xlu0 %21 }
  0x92   :  { %v23_v9 = vadd.f32 %v22_v8, %v19_v7 }
  0x94   :  { %25 = vst.msk [vmem:[%s88_s1] sm:$0xff] %vm14_vm0, %v23_v9 }
  0x95   :  { %v31_v11 = vpop.xlane.xlu0 %30 }
  0x96   :  { %v32_v12 = vadd.f32 %v31_v11, %v26_v10 }
  0x98   :  { %33 = vst.msk [vmem:[%s89_s2] sm:$0xff] %vm14_vm0, %v32_v12 }

// kernel: conditional_batch_norm.3
= control target key start
LH: loop header
LB: loop body
LE: loop exit
PB: predicated region body
PF: predicated region fallthrough
CT: control target
= control target key end

     0   :  { %v40_v0 = vmov 0   ;;  %s79_s0 = inlined_call_operand.vmem [shape: f32[8,1], index: 0, kind: input, shape index: {}]   ;;  %s80_s1 = inlined_call_operand.vmem [shape: f32[8,1], index: 1, kind: input, shape index: {}]   ;;  %s81_s2 = inlined_call_operand.vmem [shape: f32[8,256], index: 2, kind: input, shape index: {}]   ;;  %s82_s3 = inlined_call_operand.vmem [shape: f32[8,256], index: 3, kind: output, shape index: {}]  }
   0x1   :  { %39 = vset.pattern.permute.xlu0 %v40_v0  ;;  %v16_v1 = vld [vmem:[%s79_s0] sm:$0xff]  ;;  %v15_v4 = vld [vmem:[%s81_s2 + $0x8] sm:$0xff] }
   0x2   :  { %19 = vperm.xlu0 %39, %v16_v1   ;;  %v24_v2 = vld [vmem:[%s80_s1] sm:$0xff] }
   0x3   :  { %v14_v3 = vld [vmem:[%s81_s2] sm:$0xff] }
   0x6   :  { %27 = vperm.xlu0 %39, %v24_v2  }
  0x81   :  { %v20_v5 = vpop.permute.xlu0 %19 }
  0x82   :  { %v22_v6 = vmul.f32 %v20_v5, %v14_v3  ;;  %v23_v7 = vmul.f32 %v20_v5, %v15_v4 }
  0x85   :  { %v28_v8 = vpop.permute.xlu0 %27 }
  0x86   :  { %v30_v9 = vadd.f32 %v28_v8, %v22_v6  ;;  %v31_v10 = vadd.f32 %v28_v8, %v23_v7 }
  0x88   :  { %32 = vst [vmem:[%s82_s3] sm:$0xff] %v30_v9  ;;  %33 = vst [vmem:[%s82_s3 + $0x8] sm:$0xff] %v31_v10 }

</bundles_post_ra>
